<compile_context>
chip_gen: v6e
topology: v6e:2x2x1
jax: 0.10.0
libtpu: 0.0.40
codegen_flags: <defaults>
</compile_context>

<pallas_src>
import jax
import jax.numpy as jnp
from jax.experimental import pallas as pl
from jax.experimental.pallas import tpu as pltpu

LANE = 128
_EPS = 1e-5


def _round_up(n, m):
    return ((n + m - 1) // m) * m


def _pad2(a, rows, cols, dtype):
    """Zero-pad a 2-D array to (rows, cols) and cast to dtype."""
    out = jnp.zeros((rows, cols), dtype)
    return out.at[: a.shape[0], : a.shape[1]].set(a.astype(dtype))


def mlp_kernel(x_ref,
               w1_ref, b1_ref, g1_ref, be1_ref,
               w2_ref, b2_ref, g2_ref, be2_ref,
               w3_ref, b3_ref,
               o_ref):
    eps = jnp.float32(_EPS)

    def bn_relu(h, g, be):
        # Training-mode BatchNorm1d forward (biased batch variance), folded
        # into a per-feature scale/shift FMA.  All math in f32.
        mean = jnp.mean(h, axis=0, keepdims=True)
        centered = h - mean
        var = jnp.mean(centered * centered, axis=0, keepdims=True)
        scale = g * jax.lax.rsqrt(var + eps)          # [1, N], EUP once/feature
        shift = be - mean * scale                     # [1, N]
        return jnp.maximum(h * scale + shift, 0.0)    # BN + ReLU, two FMAs-ish

    # ---- fc1 (bf16 MXU inputs, f32 accumulation) + BN1 + ReLU ----
    h = jnp.dot(x_ref[...], w1_ref[...],
                preferred_element_type=jnp.float32) + b1_ref[...]
    h = bn_relu(h, g1_ref[...], be1_ref[...])
    # drop1: identity (eval-mode)

    # ---- fc2 + BN2 + ReLU ----
    h = jnp.dot(h.astype(jnp.bfloat16), w2_ref[...],
                preferred_element_type=jnp.float32) + b2_ref[...]
    h = bn_relu(h, g2_ref[...], be2_ref[...])
    # drop2: identity (eval-mode)

    # ---- fc3 (lane-dense padded output) ----
    o_ref[...] = jnp.dot(h.astype(jnp.bfloat16), w3_ref[...],
                         preferred_element_type=jnp.float32) + b3_ref[...]


def mlp_forward(x, params):
    (w1, b1, g1, be1, w2, b2, g2, be2, w3, b3) = params
    n = x.shape[0]
    nfeat, nhid = w1.shape
    nhid2 = w2.shape[1]
    out_dim = w3.shape[1]

    nfeat_p = _round_up(nfeat, LANE)
    nhid_p = _round_up(nhid, LANE)
    nhid2_p = _round_up(nhid2, LANE)
    out_p = _round_up(out_dim, LANE)

    # Pad feature dims to full 128-lane vregs / MXU columns.  Weights + x are
    # stored bf16 for the MXU; bias/gamma/beta stay f32 (BN math is f32).
    xp = _pad2(x, n, nfeat_p, jnp.bfloat16)
    w1p = _pad2(w1, nfeat_p, nhid_p, jnp.bfloat16)
    w2p = _pad2(w2, nhid_p, nhid2_p, jnp.bfloat16)
    w3p = _pad2(w3, nhid2_p, out_p, jnp.bfloat16)
    b1p = _pad2(b1, 1, nhid_p, jnp.float32)
    g1p = _pad2(g1, 1, nhid_p, jnp.float32)
    be1p = _pad2(be1, 1, nhid_p, jnp.float32)
    b2p = _pad2(b2, 1, nhid2_p, jnp.float32)
    g2p = _pad2(g2, 1, nhid2_p, jnp.float32)
    be2p = _pad2(be2, 1, nhid2_p, jnp.float32)
    b3p = _pad2(b3, 1, out_p, jnp.float32)

    flops = 2 * n * (nfeat_p * nhid_p + nhid_p * nhid2_p + nhid2_p * out_p)
    bytes_accessed = (
        2 * (xp.size + w1p.size + w2p.size + w3p.size)          # bf16 inputs
        + 4 * (b1p.size + g1p.size + be1p.size
               + b2p.size + g2p.size + be2p.size + b3p.size)    # f32 params
        + 4 * n * out_p)                                        # f32 output
    cost = pl.CostEstimate(flops=flops,
                           transcendentals=nhid_p + nhid2_p,    # rsqrt/feature
                           bytes_accessed=bytes_accessed)

    vmem = pl.BlockSpec(memory_space=pltpu.MemorySpace.VMEM)
    out_padded = pl.pallas_call(
        mlp_kernel,
        out_shape=jax.ShapeDtypeStruct((n, out_p), jnp.float32),
        in_specs=[vmem] * 11,
        out_specs=vmem,
        cost_estimate=cost,
    )(xp, w1p, b1p, g1p, be1p, w2p, b2p, g2p, be2p, w3p, b3p)

    return out_padded[:, :out_dim]


def init_params(key, nfeat, nhid, output):
    """Deterministic init mimicking the PyTorch module's parameter shapes."""
    nhid2 = int(nhid / 3)
    ks = jax.random.split(key, 6)

    def lin(kw, kb, fan_in, fan_out):
        bound = 1.0 / jnp.sqrt(jnp.float32(fan_in))
        # stored as [in, out] (transposed vs torch's [out, in]) for x @ W
        w = jax.random.uniform(kw, (fan_in, fan_out), jnp.float32, -bound, bound)
        b = jax.random.uniform(kb, (1, fan_out), jnp.float32, -bound, bound)
        return w, b

    w1, b1 = lin(ks[0], ks[1], nfeat, nhid)
    w2, b2 = lin(ks[2], ks[3], nhid, nhid2)
    w3, b3 = lin(ks[4], ks[5], nhid2, output)

    g1 = jnp.ones((1, nhid), jnp.float32)
    be1 = jnp.zeros((1, nhid), jnp.float32)
    g2 = jnp.ones((1, nhid2), jnp.float32)
    be2 = jnp.zeros((1, nhid2), jnp.float32)

    return (w1, b1, g1, be1, w2, b2, g2, be2, w3, b3)


def reference_forward(x, params):
    """Pure-JAX reference mirroring the kernel's precision (bf16 matmul inputs,
    f32 accumulation / BN statistics), for tight numerical checking."""
    (w1, b1, g1, be1, w2, b2, g2, be2, w3, b3) = params
    eps = jnp.float32(_EPS)

    def bn_relu(h, g, be):
        m = jnp.mean(h, axis=0, keepdims=True)
        v = jnp.mean((h - m) ** 2, axis=0, keepdims=True)
        scale = g * jax.lax.rsqrt(v + eps)
        shift = be - m * scale
        return jnp.maximum(h * scale + shift, 0.0)

    def mm(a, w, b):
        return jnp.dot(a.astype(jnp.bfloat16), w.astype(jnp.bfloat16),
                       preferred_element_type=jnp.float32) + b

    h = bn_relu(mm(x, w1, b1), g1, be1)
    h = bn_relu(mm(h, w2, b2), g2, be2)
    return mm(h, w3, b3)


if __name__ == "__main__":
    batch, nfeat, nhid, output = 8, 32, 48, 10   # nhid/3 == 16

    key = jax.random.PRNGKey(0)
    kx, kp = jax.random.split(key)
    x = jax.random.normal(kx, (batch, nfeat), jnp.float32)
    params = init_params(kp, nfeat, nhid, output)

    out = mlp_forward(x, params)
    out = jax.block_until_ready(out)

    ref = reference_forward(x, params)
    assert out.shape == (batch, output)
    assert jnp.allclose(out, ref, atol=2e-3, rtol=2e-3), "mismatch vs reference"

    print("KERNEL_OK")
</pallas_src>

<mosaic_0001>
module attributes {stable_mosaic.version = 11 : i64} {
  func.func @mlp_kernel(%arg0: memref<8x128xbf16, #tpu.memory_space<vmem>>, %arg1: memref<128x128xbf16, #tpu.memory_space<vmem>>, %arg2: memref<1x128xf32, #tpu.memory_space<vmem>>, %arg3: memref<1x128xf32, #tpu.memory_space<vmem>>, %arg4: memref<1x128xf32, #tpu.memory_space<vmem>>, %arg5: memref<128x128xbf16, #tpu.memory_space<vmem>>, %arg6: memref<1x128xf32, #tpu.memory_space<vmem>>, %arg7: memref<1x128xf32, #tpu.memory_space<vmem>>, %arg8: memref<1x128xf32, #tpu.memory_space<vmem>>, %arg9: memref<128x128xbf16, #tpu.memory_space<vmem>>, %arg10: memref<1x128xf32, #tpu.memory_space<vmem>>, %arg11: memref<8x128xf32, #tpu.memory_space<vmem>>) attributes {dimension_semantics = [], scalar_prefetch = 0 : i64, scratch_operands = 0 : i64, tpu.core_type = #tpu.core_type<tc>} {
    %c0 = arith.constant 0 : index
    %c0_0 = arith.constant 0 : index
    %0 = vector.load %arg0[%c0, %c0_0] : memref<8x128xbf16, #tpu.memory_space<vmem>>, vector<8x128xbf16>
    %c0_1 = arith.constant 0 : index
    %c0_2 = arith.constant 0 : index
    %1 = vector.load %arg1[%c0_1, %c0_2] : memref<128x128xbf16, #tpu.memory_space<vmem>>, vector<128x128xbf16>
    %cst = arith.constant dense<0.000000e+00> : vector<8x128xf32>
    %2 = tpu.matmul %0, %1, %cst {dimension_numbers = #tpu.dot_dimension_numbers<[1], [0], [0], [1], [0, 0, 1, 1], [], []>} : vector<8x128xbf16>, vector<128x128xbf16>, vector<8x128xf32> -> vector<8x128xf32>
    %c0_3 = arith.constant 0 : index
    %c0_4 = arith.constant 0 : index
    %3 = vector.load %arg2[%c0_3, %c0_4] : memref<1x128xf32, #tpu.memory_space<vmem>>, vector<1x128xf32>
    %4 = vector.broadcast %3 : vector<1x128xf32> to vector<8x128xf32>
    %5 = arith.addf %2, %4 : vector<8x128xf32>
    %c0_5 = arith.constant 0 : index
    %c0_6 = arith.constant 0 : index
    %6 = vector.load %arg3[%c0_5, %c0_6] : memref<1x128xf32, #tpu.memory_space<vmem>>, vector<1x128xf32>
    %c0_7 = arith.constant 0 : index
    %c0_8 = arith.constant 0 : index
    %7 = vector.load %arg4[%c0_7, %c0_8] : memref<1x128xf32, #tpu.memory_space<vmem>>, vector<1x128xf32>
    %cst_9 = arith.constant dense<0.000000e+00> : vector<128xf32>
    %8 = vector.multi_reduction <add>, %5, %cst_9 [0] : vector<8x128xf32> to vector<128xf32>
    %9 = vector.shape_cast %8 : vector<128xf32> to vector<1x128xf32>
    %cst_10 = arith.constant 8.000000e+00 : f32
    %10 = vector.broadcast %cst_10 : f32 to vector<1x128xf32>
    %11 = arith.divf %9, %10 : vector<1x128xf32>
    %12 = vector.broadcast %11 : vector<1x128xf32> to vector<8x128xf32>
    %13 = arith.subf %5, %12 : vector<8x128xf32>
    %14 = arith.mulf %13, %13 : vector<8x128xf32>
    %cst_11 = arith.constant dense<0.000000e+00> : vector<128xf32>
    %15 = vector.multi_reduction <add>, %14, %cst_11 [0] : vector<8x128xf32> to vector<128xf32>
    %16 = vector.shape_cast %15 : vector<128xf32> to vector<1x128xf32>
    %cst_12 = arith.constant 8.000000e+00 : f32
    %17 = vector.broadcast %cst_12 : f32 to vector<1x128xf32>
    %18 = arith.divf %16, %17 : vector<1x128xf32>
    %cst_13 = arith.constant 9.99999974E-6 : f32
    %19 = vector.broadcast %cst_13 : f32 to vector<1x128xf32>
    %20 = arith.addf %18, %19 : vector<1x128xf32>
    %21 = math.rsqrt %20 : vector<1x128xf32>
    %22 = arith.mulf %6, %21 : vector<1x128xf32>
    %23 = arith.mulf %11, %22 : vector<1x128xf32>
    %24 = arith.subf %7, %23 : vector<1x128xf32>
    %25 = vector.broadcast %22 : vector<1x128xf32> to vector<8x128xf32>
    %26 = arith.mulf %5, %25 : vector<8x128xf32>
    %27 = vector.broadcast %24 : vector<1x128xf32> to vector<8x128xf32>
    %28 = arith.addf %26, %27 : vector<8x128xf32>
    %cst_14 = arith.constant 0.000000e+00 : f32
    %29 = vector.broadcast %cst_14 : f32 to vector<8x128xf32>
    %30 = arith.maximumf %28, %29 : vector<8x128xf32>
    %31 = arith.truncf %30 : vector<8x128xf32> to vector<8x128xbf16>
    %c0_15 = arith.constant 0 : index
    %c0_16 = arith.constant 0 : index
    %32 = vector.load %arg5[%c0_15, %c0_16] : memref<128x128xbf16, #tpu.memory_space<vmem>>, vector<128x128xbf16>
    %cst_17 = arith.constant dense<0.000000e+00> : vector<8x128xf32>
    %33 = tpu.matmul %31, %32, %cst_17 {dimension_numbers = #tpu.dot_dimension_numbers<[1], [0], [0], [1], [0, 0, 1, 1], [], []>} : vector<8x128xbf16>, vector<128x128xbf16>, vector<8x128xf32> -> vector<8x128xf32>
    %c0_18 = arith.constant 0 : index
    %c0_19 = arith.constant 0 : index
    %34 = vector.load %arg6[%c0_18, %c0_19] : memref<1x128xf32, #tpu.memory_space<vmem>>, vector<1x128xf32>
    %35 = vector.broadcast %34 : vector<1x128xf32> to vector<8x128xf32>
    %36 = arith.addf %33, %35 : vector<8x128xf32>
    %c0_20 = arith.constant 0 : index
    %c0_21 = arith.constant 0 : index
    %37 = vector.load %arg7[%c0_20, %c0_21] : memref<1x128xf32, #tpu.memory_space<vmem>>, vector<1x128xf32>
    %c0_22 = arith.constant 0 : index
    %c0_23 = arith.constant 0 : index
    %38 = vector.load %arg8[%c0_22, %c0_23] : memref<1x128xf32, #tpu.memory_space<vmem>>, vector<1x128xf32>
    %cst_24 = arith.constant dense<0.000000e+00> : vector<128xf32>
    %39 = vector.multi_reduction <add>, %36, %cst_24 [0] : vector<8x128xf32> to vector<128xf32>
    %40 = vector.shape_cast %39 : vector<128xf32> to vector<1x128xf32>
    %cst_25 = arith.constant 8.000000e+00 : f32
    %41 = vector.broadcast %cst_25 : f32 to vector<1x128xf32>
    %42 = arith.divf %40, %41 : vector<1x128xf32>
    %43 = vector.broadcast %42 : vector<1x128xf32> to vector<8x128xf32>
    %44 = arith.subf %36, %43 : vector<8x128xf32>
    %45 = arith.mulf %44, %44 : vector<8x128xf32>
    %cst_26 = arith.constant dense<0.000000e+00> : vector<128xf32>
    %46 = vector.multi_reduction <add>, %45, %cst_26 [0] : vector<8x128xf32> to vector<128xf32>
    %47 = vector.shape_cast %46 : vector<128xf32> to vector<1x128xf32>
    %cst_27 = arith.constant 8.000000e+00 : f32
    %48 = vector.broadcast %cst_27 : f32 to vector<1x128xf32>
    %49 = arith.divf %47, %48 : vector<1x128xf32>
    %cst_28 = arith.constant 9.99999974E-6 : f32
    %50 = vector.broadcast %cst_28 : f32 to vector<1x128xf32>
    %51 = arith.addf %49, %50 : vector<1x128xf32>
    %52 = math.rsqrt %51 : vector<1x128xf32>
    %53 = arith.mulf %37, %52 : vector<1x128xf32>
    %54 = arith.mulf %42, %53 : vector<1x128xf32>
    %55 = arith.subf %38, %54 : vector<1x128xf32>
    %56 = vector.broadcast %53 : vector<1x128xf32> to vector<8x128xf32>
    %57 = arith.mulf %36, %56 : vector<8x128xf32>
    %58 = vector.broadcast %55 : vector<1x128xf32> to vector<8x128xf32>
    %59 = arith.addf %57, %58 : vector<8x128xf32>
    %cst_29 = arith.constant 0.000000e+00 : f32
    %60 = vector.broadcast %cst_29 : f32 to vector<8x128xf32>
    %61 = arith.maximumf %59, %60 : vector<8x128xf32>
    %62 = arith.truncf %61 : vector<8x128xf32> to vector<8x128xbf16>
    %c0_30 = arith.constant 0 : index
    %c0_31 = arith.constant 0 : index
    %63 = vector.load %arg9[%c0_30, %c0_31] : memref<128x128xbf16, #tpu.memory_space<vmem>>, vector<128x128xbf16>
    %cst_32 = arith.constant dense<0.000000e+00> : vector<8x128xf32>
    %64 = tpu.matmul %62, %63, %cst_32 {dimension_numbers = #tpu.dot_dimension_numbers<[1], [0], [0], [1], [0, 0, 1, 1], [], []>} : vector<8x128xbf16>, vector<128x128xbf16>, vector<8x128xf32> -> vector<8x128xf32>
    %c0_33 = arith.constant 0 : index
    %c0_34 = arith.constant 0 : index
    %65 = vector.load %arg10[%c0_33, %c0_34] : memref<1x128xf32, #tpu.memory_space<vmem>>, vector<1x128xf32>
    %66 = vector.broadcast %65 : vector<1x128xf32> to vector<8x128xf32>
    %67 = arith.addf %64, %66 : vector<8x128xf32>
    %c0_35 = arith.constant 0 : index
    %c0_36 = arith.constant 0 : index
    %68 = vector.load %arg11[%c0_35, %c0_36] : memref<8x128xf32, #tpu.memory_space<vmem>>, vector<8x128xf32>
    tpu.vector_store %arg11[%c0_35, %c0_36], %67 {strides = array<i32>} : memref<8x128xf32, #tpu.memory_space<vmem>>, vector<8x128xf32>,
    return
  }
}

</mosaic_0001>

<bundles_post_ra>
// kernel: tpu_custom_call.1
= control target key start
LH: loop header
LB: loop body
LE: loop exit
PB: predicated region body
PF: predicated region fallthrough
CT: control target
= control target key end

     0   :  { %16 = vsyncpa [#allocation3], 0  ;;  %s933_s0 = inlined_call_operand.hbm [shape: bf16[8,128], index: 0, kind: input, shape index: {}]   ;;  %s934_s1 = inlined_call_operand.hbm [shape: bf16[128,128], index: 1, kind: input, shape index: {}]   ;;  %s935_s2 = inlined_call_operand.vmem [shape: f32[1,128], index: 2, kind: input, shape index: {}]   ;;  %s936_s3 = inlined_call_operand.vmem [shape: f32[1,128], index: 3, kind: input, shape index: {}]   ;;  %s937_s4 = inlined_call_operand.vmem [shape: f32[1,128], index: 4, kind: input, shape index: {}]   ;;  %s938_s5 = inlined_call_operand.hbm [shape: bf16[128,128], index: 5, kind: input, shape index: {}]   ;;  %s939_s6 = inlined_call_operand.vmem [shape: f32[1,128], index: 6, kind: input, shape index: {}]   ;;  %s940_s7 = inlined_call_operand.vmem [shape: f32[1,128], index: 7, kind: input, shape index: {}]   ;;  %s941_s8 = inlined_call_operand.vmem [shape: f32[1,128], index: 8, kind: input, shape index: {}]   ;;  %s942_s9 = inlined_call_operand.hbm [shape: bf16[128,128], index: 9, kind: input, shape index: {}]   ;;  %s943_s10 = inlined_call_operand.vmem [shape: f32[1,128], index: 10, kind: input, shape index: {}]   ;;  %s944_s11 = inlined_call_operand.hbm [shape: f32[8,128], index: 11, kind: output, shape index: {}]  }
   0x1   :  { %17 = vsyncpa [#allocation6], 0 }
   0x2   :  { %18 = vsyncpa [#allocation9], 0 }
   0x3   :  { %19 = vsyncpa [#allocation4], 0  ;;  %s783_s17 = smov [#allocation5]  }
   0x4   :  { %s35_s18 = sshll.u32 %s783_s17, 4  ;;  %s36_s18 = int_to_ptr.vmem [resolvable:$true] %s35_s18 }
   0x5   :  { %s683_s19 = scalar_lea.vmem %s36_s18, 1024  ;;  %p688_p1 = scmp.lt.s32.totalorder %s36_s18, %s36_s18 }
   0x6   :  { %p684_p0 = scmp.ne.s32.totalorder %s36_s18, %s683_s19  ;;  %p689_p2 = scmp.lt.s32.totalorder %s683_s19, %s683_s19 }
   0x8   :  { %p690_p3 = por %p689_p2, %p688_p1 }
   0xa   :  { %p691_p4 = pnand %p690_p3, %p684_p0 }
   0xc   :  { %694 = shalt.err (!%p691_p4)
}
   0xd   :  { %s784_s20 = smov 64   ;;  %s785_s21 = smov 4  }
   0xe   :  { %41 = dma.hbm_to_vmem [thread:$0]  %s934_s1, 1024, %s36_s18, [#allocation6], %s784_s20, %s784_s20, %s785_s21  }
   0xf   :  { %s786_s24 = smov [#allocation2]   ;;  %s787_s26 = smov [#allocation7]  }
  0x10   :  { %s26_s25 = sshll.u32 %s786_s24, 4  ;;  %s53_s27 = sshll.u32 %s787_s26, 4  ;;  %s27_s25 = int_to_ptr.vmem [resolvable:$true] %s26_s25  ;;  %s54_s27 = int_to_ptr.vmem [resolvable:$true] %s53_s27 }
  0x11   :  { %s703_s28 = scalar_lea.vmem %s27_s25, 64  ;;  %p708_p6 = scmp.lt.s32.totalorder %s27_s25, %s27_s25 }
  0x12   :  { %p704_p5 = scmp.ne.s32.totalorder %s27_s25, %s703_s28  ;;  %p709_p7 = scmp.lt.s32.totalorder %s703_s28, %s703_s28 }
  0x14   :  { %p710_p8 = por %p709_p7, %p708_p6 }
  0x16   :  { %p711_p9 = pnand %p710_p8, %p704_p5 }
  0x18   :  { %714 = shalt.err (!%p711_p9)
}
  0x19   :  { %29 = dma.hbm_to_vmem [thread:$0]  %s933_s0, 64, %s27_s25, [#allocation3]  }
  0x1a   :  { %s723_s12 = scalar_lea.vmem %s54_s27, 1024  ;;  %p728_p11 = scmp.lt.s32.totalorder %s54_s27, %s54_s27 }
  0x1b   :  { %p724_p10 = scmp.ne.s32.totalorder %s54_s27, %s723_s12  ;;  %p729_p12 = scmp.lt.s32.totalorder %s723_s12, %s723_s12 }
  0x1d   :  { %p730_p13 = por %p729_p12, %p728_p11 }
  0x1f   :  { %p731_p0 = pnand %p730_p13, %p724_p10 }
  0x21   :  { %734 = shalt.err (!%p731_p0)
}
  0x22   :  { %59 = dma.hbm_to_vmem [thread:$0]  %s938_s5, 1024, %s54_s27, [#allocation6], %s784_s20, %s784_s20, %s785_s21  }
  0x23   :  { %s788_s14 = smov [#allocation8]  }
  0x24   :  { %s71_s15 = sshll.u32 %s788_s14, 4  ;;  %s72_s15 = int_to_ptr.vmem [resolvable:$true] %s71_s15 }
  0x25   :  { %s743_s16 = scalar_lea.vmem %s72_s15, 1024  ;;  %p748_p2 = scmp.lt.s32.totalorder %s72_s15, %s72_s15 }
  0x26   :  { %p744_p1 = scmp.ne.s32.totalorder %s72_s15, %s743_s16  ;;  %p749_p3 = scmp.lt.s32.totalorder %s743_s16, %s743_s16 }
  0x28   :  { %p750_p4 = por %p749_p3, %p748_p2 }
  0x2a   :  { %p751_p5 = pnand %p750_p4, %p744_p1 }
  0x2c   :  { %754 = shalt.err (!%p751_p5)
}
  0x2d   :  { %77 = dma.hbm_to_vmem [thread:$0]  %s942_s9, 1024, %s72_s15, [#allocation9], %s784_s20, %s784_s20, %s785_s21  }
  0x2e   :  { %775 = dma.done.wait [#allocation3], 64  }
  0x2f   :  { %776 = vsyncadd [#allocation3], 4294967232 }
  0x30   :  { %777 = dma.done.wait [#allocation6], 2048  }
  0x31   :  { %778 = vsyncadd [#allocation6], 4294965248 }
  0x32   :  { %779 = dma.done.wait [#allocation9], 1024  }
  0x33   :  { %780 = vsyncadd [#allocation9], 4294966272  ;;  %v789_v0 = vmov 0.0   ;;  %vm790_vm0 = vmmov 0   ;;  %v647_v1 = vld [vmem:[#allocation5 + $0x38] sm:$0xff]   ;;  %v648_v2 = vld [vmem:[#allocation5 + $0x30] sm:$0xff]   ;;  %v230_v41 = vlaneseq }
  0x34   :  { %578 = vmatprep.subr.bf16.mxu0 %v789_v0  ;;  %594 = vmatprep.mubr.msk.bf16.mxu0 %vm790_vm0, %v789_v0  ;;  %v649_v3 = vld [vmem:[#allocation5 + $0x28] sm:$0xff]   ;;  %v650_v4 = vld [vmem:[#allocation5 + $0x20] sm:$0xff]   ;;  %v651_v5 = vld [vmem:[#allocation5 + $0x18] sm:$0xff]  }
  0x35   :  { %598 = vmatprep.subr.bf16.mxu1 %v789_v0  ;;  %614 = vmatprep.mubr.msk.bf16.mxu1 %vm790_vm0, %v789_v0  ;;  %v652_v6 = vld [vmem:[#allocation5 + $0x10] sm:$0xff]   ;;  %v653_v7 = vld [vmem:[#allocation5 + $0x8] sm:$0xff]   ;;  %v654_v8 = vld [vmem:[#allocation5] sm:$0xff]   ;;  %v231_v42 = vshrl.u32 %v230_v41, 7 }
  0x36   :  { %579 = vmatpush3.bf16.msra.mxu0 %v647_v1  ;;  %v93_v9 = vld [vmem:[#allocation2] sm:$0xf]  ;;  %v656_v11 = vld [vmem:[#allocation7 + $0x30] sm:$0xff]   ;;  %v657_v12 = vld [vmem:[#allocation7 + $0x28] sm:$0xff]  }
  0x37   :  { %580 = vmatprep.subr.bf16.mxu0 %v789_v0  ;;  %v655_v10 = vld [vmem:[#allocation7 + $0x38] sm:$0xff]   ;;  %v658_v13 = vld [vmem:[#allocation7 + $0x20] sm:$0xff]   ;;  %v660_v15 = vld [vmem:[#allocation7 + $0x10] sm:$0xff]   ;;  %v902_v44 = vsub.s32 0, %v231_v42 }
  0x38   :  { %599 = vmatpush3.bf16.msra.mxu1 %v655_v10  ;;  %v659_v14 = vld [vmem:[#allocation7 + $0x18] sm:$0xff]   ;;  %v661_v16 = vld [vmem:[#allocation7 + $0x8] sm:$0xff]   ;;  %v662_v17 = vld [vmem:[#allocation7] sm:$0xff]  }
  0x39   :  { %600 = vmatprep.subr.bf16.mxu1 %v789_v0  ;;  %v524_v18 = vld [vmem:[%s935_s2] ss:$0 sm:$0xff]  ;;  %v664_v57 = vld [vmem:[#allocation8 + $0x30] sm:$0xff]   ;;  %v665_v58 = vld [vmem:[#allocation8 + $0x28] sm:$0xff]  }
  0x3a   :  { %581 = vmatpush3.bf16.msra.mxu0 %v648_v2  ;;  %v205_v43 = vld [vmem:[%s936_s3] sm:$0x1]  ;;  %v666_v59 = vld [vmem:[#allocation8 + $0x20] sm:$0xff]   ;;  %v668_v61 = vld [vmem:[#allocation8 + $0x10] sm:$0xff]  }
  0x3b   :  { %582 = vmatprep.subr.bf16.mxu0 %v789_v0  ;;  %v206_v47 = vld [vmem:[%s937_s4] sm:$0x1]  ;;  %v669_v62 = vld [vmem:[#allocation8 + $0x8] sm:$0xff]   ;;  %v670_v63 = vld [vmem:[#allocation8] sm:$0xff]  }
  0x3c   :  { %601 = vmatpush3.bf16.msra.mxu1 %v656_v11  ;;  %v663_v56 = vld [vmem:[#allocation8 + $0x38] sm:$0xff]  }
  0x3d   :  { %602 = vmatprep.subr.bf16.mxu1 %v789_v0  ;;  %v667_v60 = vld [vmem:[#allocation8 + $0x18] sm:$0xff]  }
  0x3e   :  { %583 = vmatpush3.bf16.msra.mxu0 %v649_v3  ;;  %v533_v1 = vld [vmem:[%s939_s6] ss:$0 sm:$0xff] }
  0x3f   :  { %584 = vmatprep.subr.bf16.mxu0 %v789_v0 }
  0x40   :  { %603 = vmatpush3.bf16.msra.mxu1 %v657_v12 }
  0x41   :  { %604 = vmatprep.subr.bf16.mxu1 %v789_v0 }
  0x42   :  { %585 = vmatpush3.bf16.msra.mxu0 %v650_v4 }
  0x43   :  { %586 = vmatprep.subr.bf16.mxu0 %v789_v0 }
  0x44   :  { %605 = vmatpush3.bf16.msra.mxu1 %v658_v13 }
  0x45   :  { %606 = vmatprep.subr.bf16.mxu1 %v789_v0 }
  0x46   :  { %587 = vmatpush3.bf16.msra.mxu0 %v651_v5 }
  0x47   :  { %588 = vmatprep.subr.bf16.mxu0 %v789_v0 }
  0x48   :  { %607 = vmatpush3.bf16.msra.mxu1 %v659_v14 }
  0x49   :  { %608 = vmatprep.subr.bf16.mxu1 %v789_v0 }
  0x4a   :  { %589 = vmatpush3.bf16.msra.mxu0 %v652_v6 }
  0x4b   :  { %590 = vmatprep.subr.bf16.mxu0 %v789_v0 }
  0x4c   :  { %609 = vmatpush3.bf16.msra.mxu1 %v660_v15 }
  0x4d   :  { %610 = vmatprep.subr.bf16.mxu1 %v789_v0 }
  0x4e   :  { %591 = vmatpush3.bf16.msra.mxu0 %v653_v7 }
  0x4f   :  { %592 = vmatprep.subr.bf16.mxu0 %v789_v0 }
  0x50   :  { %611 = vmatpush3.bf16.msra.mxu1 %v661_v16 }
  0x51   :  { %612 = vmatprep.subr.bf16.mxu1 %v789_v0 }
  0x52   :  { %593 = vmatpush3.bf16.msra.mxu0 %v654_v8 }
  0x53   :  { %618 = vmatprep.subr.bf16.mxu0 %v789_v0 }
  0x54   :  { %613 = vmatpush3.bf16.msra.mxu1 %v662_v17 }
  0x55   :  { %595 = vmatmul.mubr.bf16.vlgmr.msra.gmra.mxu0 %v93_v9 }
  0x56   :  { %634 = vmatprep.mubr.msk.bf16.mxu0 %vm790_vm0, %v789_v0  ;;  %619 = vmatpush3.bf16.msra.mxu0 %v663_v56 }
  0x57   :  { %620 = vmatprep.subr.bf16.mxu0 %v789_v0 }
  0x5a   :  { %621 = vmatpush3.bf16.msra.mxu0 %v664_v57 }
  0x5b   :  { %622 = vmatprep.subr.bf16.mxu0 %v789_v0 }
  0x5e   :  { %623 = vmatpush3.bf16.msra.mxu0 %v665_v58 }
  0x5f   :  { %624 = vmatprep.subr.bf16.mxu0 %v789_v0 }
  0x62   :  { %625 = vmatpush3.bf16.msra.mxu0 %v666_v59 }
  0x63   :  { %626 = vmatprep.subr.bf16.mxu0 %v789_v0 }
  0x66   :  { %627 = vmatpush3.bf16.msra.mxu0 %v667_v60 }
  0x67   :  { %628 = vmatprep.subr.bf16.mxu0 %v789_v0 }
  0x6a   :  { %629 = vmatpush3.bf16.msra.mxu0 %v668_v61 }
  0x6b   :  { %630 = vmatprep.subr.bf16.mxu0 %v789_v0 }
  0x6e   :  { %631 = vmatpush3.bf16.msra.mxu0 %v669_v62 }
  0x6f   :  { %632 = vmatprep.subr.bf16.mxu0 %v789_v0 }
  0x72   :  { %633 = vmatpush3.bf16.msra.mxu0 %v670_v63 }
 0x115   :  { %v199_v19 = vpop.f32.mrf.mxu0 }
 0x116   :  { %v200_v20 = vadd.f32 %v524_v18, %v199_v19 }
 0x117   :  { %v596_v21 = vpop.f32.mrf.mxu0 }
 0x118   :  { %v207_v22 = vrot.slane %v200_v20, 4 }
 0x119   :  { %v202_v23 = vpop.f32.mrf.mxu0 }
 0x11a   :  { %v208_v24 = vadd.f32 %v207_v22, %v200_v20  ;;  %v356_v23 = vld [vmem:[%s940_s7] sm:$0x1]  ;;  %s791_s7 = smov [#allocation10]  }
 0x11b   :  { %v597_v25 = vpop.f32.mrf.mxu0  ;;  %s513_s26 = sshll.u32 %s791_s7, 4  ;;  %s514_s26 = int_to_ptr.vmem [resolvable:$true] %s513_s26 }
 0x11c   :  { %v209_v26 = vrot.slane %v208_v24, 2  ;;  %p760_p7 = scmp.lt.s32.totalorder %s514_s26, %s514_s26 }
 0x11e   :  { %v210_v27 = vadd.f32 %v209_v26, %v208_v24  ;;  %v357_v26 = vld [vmem:[%s941_s8] sm:$0x1]  ;;  %s755_s8 = scalar_lea.vmem %s514_s26, 128 }
 0x11f   :  { %p756_p6 = scmp.ne.s32.totalorder %s514_s26, %s755_s8  ;;  %p761_p8 = scmp.lt.s32.totalorder %s755_s8, %s755_s8 }
 0x120   :  { %v211_v28 = vrot.slane %v210_v27, 1 }
 0x121   :  { %p762_p9 = por %p761_p8, %p760_p7 }
 0x122   :  { %v212_v29 = vadd.f32 %v211_v28, %v210_v27 }
 0x123   :  { %p763_p10 = pnand %p762_p9, %p756_p6 }
 0x124   :  { %v214_v30 = vmul.f32 0.125, %v212_v29 }
 0x126   :  { %v215_v31 = vsub.f32 %v200_v20, %v214_v30 }
 0x128   :  { %v216_v32 = vmul.f32 %v215_v31, %v215_v31 }
 0x12a   :  { %v217_v33 = vrot.slane %v216_v32, 4 }
 0x12c   :  { %v218_v34 = vadd.f32 %v217_v33, %v216_v32 }
 0x12e   :  { %v219_v35 = vrot.slane %v218_v34, 2 }
 0x130   :  { %v220_v36 = vadd.f32 %v219_v35, %v218_v34  ;;  %v542_v35 = vld [vmem:[%s943_s10] ss:$0 sm:$0xff] }
 0x132   :  { %v221_v37 = vrot.slane %v220_v36, 1 }
 0x134   :  { %v222_v38 = vadd.f32 %v221_v37, %v220_v36 }
 0x136   :  { %v223_v39 = vmul.f32 0.125, %v222_v38 }
 0x138   :  { %v224_v40 = vadd.f32 1e-05, %v223_v39 }
 0x13a   :  { %671 = vrsqrt.f32 %v224_v40 }
 0x147   :  { %v672_v45 = vpop.eup %671 }
 0x148   :  { %v226_v46 = vmul.f32 %v672_v45, %v205_v43 }
 0x14a   :  { %v227_v48 = vmul.f32 %v226_v46, %v214_v30  ;;  %v233_v49 = vrot.slane %v226_v46, %v902_v44 }
 0x14c   :  { %v228_v50 = vsub.f32 %v206_v47, %v227_v48  ;;  %v235_v51 = vmul.f32 %v233_v49, %v200_v20 }
 0x14e   :  { %v240_v52 = vrot.slane %v228_v50, %v902_v44 }
 0x150   :  { %v242_v53 = vadd.f32 %v240_v52, %v235_v51 }
 0x152   :  { %v243_v54 = vmax.f32 %v242_v53, 0.0 }
 0x154   :  { %v244_v55 = vpack.c.bf16 %v243_v54, %v243_v54 }
 0x156   :  { %615 = vmatmul.mubr.bf16.vlgmr.msra.gmra.mxu1 %v244_v55 }
 0x216   :  { %v350_v2 = vpop.f32.mrf.mxu1 }
 0x217   :  { %v351_v3 = vadd.f32 %v533_v1, %v350_v2 }
 0x218   :  { %v616_v4 = vpop.f32.mrf.mxu1 }
 0x219   :  { %v358_v5 = vrot.slane %v351_v3, 4 }
 0x21a   :  { %v353_v6 = vpop.f32.mrf.mxu1 }
 0x21b   :  { %v359_v7 = vadd.f32 %v358_v5, %v351_v3 }
 0x21c   :  { %v617_v8 = vpop.f32.mrf.mxu1 }
 0x21d   :  { %v360_v9 = vrot.slane %v359_v7, 2 }
 0x21f   :  { %v361_v10 = vadd.f32 %v360_v9, %v359_v7 }
 0x221   :  { %v362_v11 = vrot.slane %v361_v10, 1 }
 0x223   :  { %v363_v12 = vadd.f32 %v362_v11, %v361_v10 }
 0x225   :  { %v364_v13 = vmul.f32 0.125, %v363_v12 }
 0x227   :  { %v365_v14 = vsub.f32 %v351_v3, %v364_v13 }
 0x229   :  { %v366_v15 = vmul.f32 %v365_v14, %v365_v14 }
 0x22b   :  { %v367_v0 = vrot.slane %v366_v15, 4 }
 0x22d   :  { %v368_v16 = vadd.f32 %v367_v0, %v366_v15 }
 0x22f   :  { %v369_v17 = vrot.slane %v368_v16, 2 }
 0x231   :  { %v370_v18 = vadd.f32 %v369_v17, %v368_v16 }
 0x233   :  { %v371_v19 = vrot.slane %v370_v18, 1 }
 0x235   :  { %v372_v20 = vadd.f32 %v371_v19, %v370_v18 }
 0x237   :  { %v373_v21 = vmul.f32 0.125, %v372_v20 }
 0x239   :  { %v374_v22 = vadd.f32 1e-05, %v373_v21 }
 0x23b   :  { %673 = vrsqrt.f32 %v374_v22 }
 0x248   :  { %v674_v24 = vpop.eup %673 }
 0x249   :  { %v376_v25 = vmul.f32 %v674_v24, %v356_v23 }
 0x24b   :  { %v377_v27 = vmul.f32 %v376_v25, %v364_v13  ;;  %v383_v28 = vrot.slane %v376_v25, %v902_v44 }
 0x24d   :  { %v378_v29 = vsub.f32 %v357_v26, %v377_v27  ;;  %v385_v30 = vmul.f32 %v383_v28, %v351_v3 }
 0x24f   :  { %v390_v31 = vrot.slane %v378_v29, %v902_v44 }
 0x251   :  { %v392_v32 = vadd.f32 %v390_v31, %v385_v30 }
 0x253   :  { %v393_v33 = vmax.f32 %v392_v32, 0.0 }
 0x255   :  { %v394_v34 = vpack.c.bf16 %v393_v33, %v393_v33 }
 0x257   :  { %635 = vmatmul.mubr.bf16.vlgmr.msra.gmra.mxu0 %v394_v34 }
 0x317   :  { %v500_v36 = vpop.f32.mrf.mxu0 }
 0x318   :  { %v501_v37 = vadd.f32 %v542_v35, %v500_v36 }
 0x319   :  { %v636_v38 = vpop.f32.mrf.mxu0 }
 0x31a   :  { %506 = vst [vmem:[#allocation10] sm:$0xff] %v501_v37 }
 0x31b   :  { %v503_v39 = vpop.f32.mrf.mxu0 }
 0x31c   :  { %766 = shalt.err (!%p763_p10)
}
 0x31d   :  { %516 = dma.vmem_to_hbm [thread:$0]  %s514_s26, 128, %s944_s11, [#allocation4]   ;;  %v637_v40 = vpop.f32.mrf.mxu0 }
 0x31e   :  { %781 = dma.done.wait [#allocation4], 128  }
 0x31f   :  { %782 = vsyncadd [#allocation4], 4294967168 }
 0x320   :  { %520 = vsyncpa [#allocation3], 1 }
 0x321   :  { %521 = vsyncpa [#allocation6], 1 }
 0x322   :  { %522 = vsyncpa [#allocation9], 1 }
 0x323   :  { %523 = vsyncpa [#allocation4], 1 }

</bundles_post_ra>
